<compile_context>
chip_gen: v7x
topology: tpu7x:2x2x1
jax: 0.10.0
libtpu: 0.0.40
codegen_flags: <defaults>
</compile_context>

<pallas_src>
import jax
import jax.numpy as jnp
from jax.experimental import pallas as pl
from jax.experimental.pallas import tpu as pltpu

EPS = 1e-5                      # PyTorch BatchNorm2d default eps
TM_TARGET = 2048                # default M-tile (rows); ~7 MiB VMEM worst case
VMEM_LIMIT = 32 * 1024 * 1024   # explicit scoped-VMEM budget (safe on v5e/v6e/v7x)

STRIDES = (2, 2, 2, 1)
PADS = (3, 1, 1, 0)


# ------------------------------- small helpers ------------------------------

def _round_up(x, m):
    return (x + m - 1) // m * m


def _cdiv(a, b):
    return -(-a // b)


# ------------------------------ in-kernel helper ----------------------------

def _tile_stats(acc, tm, m):
    """Per-tile centered batch statistics over the valid (un-padded) rows.

    Rows >= M are zero patch rows, so their GEMM output is exactly 0 and they
    drop out of the sum for free; they are masked out of the centered second
    moment.  The XLA glue Chan-combines (count, sum, M2) across tiles, which
    avoids the catastrophic cancellation of a global E[x^2]-E[x]^2.
    """
    i = pl.program_id(0)
    cnt = jnp.minimum(tm, m - i * tm)                         # valid rows, always >= 1
    s = jnp.sum(acc, axis=0, keepdims=True)                   # (1, Op)
    mu = s / cnt.astype(jnp.float32)
    rid = jax.lax.broadcasted_iota(jnp.int32, acc.shape, 0)
    d = jnp.where(rid < cnt, acc - mu, 0.0)
    m2 = jnp.sum(d * d, axis=0, keepdims=True)                # (1, Op)
    return s, m2


# ------------------------------- host helpers ------------------------------

def _im2col(x_nhwc, c_real, kh, kw, stride, pad, k_pad_to):
    """Extract conv patches (feature order kh, kw, Cin; kh slowest); K zero-padded
    to k_pad_to as part of the same concat (no second full-array pad pass)."""
    # TODO(synk): the patch matrix is still materialized in HBM (kh*kw/stride^2
    # duplication); in-kernel halo-slab patch formation (manual make_async_copy
    # of a ((th-1)*stride+kh, Wp, C) slab with memory_space=pl.ANY) is the
    # remaining large HBM win and is left as a further optimization.
    N, H, W, _ = x_nhwc.shape
    x = x_nhwc[..., :c_real]                     # drop lane-padding channels lazily
    xp = jnp.pad(x, ((0, 0), (pad, pad), (pad, pad), (0, 0)))
    Ho = (H + 2 * pad - kh) // stride + 1
    Wo = (W + 2 * pad - kw) // stride + 1
    cols = []
    for i in range(kh):
        for j in range(kw):
            cols.append(xp[:, i:i + stride * Ho:stride,
                           j:j + stride * Wo:stride, :])
    K = kh * kw * c_real
    if k_pad_to > K:
        cols.append(jnp.zeros((N, Ho, Wo, k_pad_to - K), x.dtype))
    patches = jnp.concatenate(cols, axis=-1)     # (N, Ho, Wo, Kp)
    return patches.reshape(N * Ho * Wo, k_pad_to), (N, Ho, Wo)


def conv_bn_relu(x_nhwc, layer, out_dtype, tm_target=TM_TARGET):
    kh, kw = layer["kh"], layer["kw"]
    stride, pad = layer["stride"], layer["pad"]
    Kp, Op = layer["Kp"], layer["Op"]

    # ---- GEMM LHS ----
    if (kh == 1 and kw == 1 and stride == 1 and pad == 0
            and x_nhwc.shape[-1] == Kp):
        # 1x1 conv: the previous layer's lane-padded activation IS the patch
        # matrix (pad channels and matching padded weight rows are exactly 0).
        N, Ho, Wo = x_nhwc.shape[0], x_nhwc.shape[1], x_nhwc.shape[2]
        patches = x_nhwc.reshape(N * Ho * Wo, Kp)
    else:
        patches, (N, Ho, Wo) = _im2col(x_nhwc, layer["c_in"], kh, kw, stride, pad, Kp)
    M = N * Ho * Wo

    # ---- M tiling: big tiles, but never collapse to a single tile when there
    # is enough work to split across both v7x TensorCores ----
    TM = min(tm_target, _round_up(M, 16))        # multiple of 16 (bf16 sublane tile)
    if _cdiv(M, TM) == 1 and M > 16:
        TM = _round_up(_cdiv(M, 2), 16)          # force 2 tiles -> megacore on v7x
    num_tiles = _cdiv(M, TM)
    Mp = num_tiles * TM
    if Mp > M:
        patches = jnp.pad(patches, ((0, Mp - M), (0, 0)))   # zero rows: masked out of stats

    w = layer["w"]                               # (Kp, Op) bf16, pre-packed at init
    cp = pltpu.CompilerParams(dimension_semantics=("parallel",),
                              vmem_limit_bytes=VMEM_LIMIT)

    # shared specs
    p_spec = pl.BlockSpec((TM, Kp), lambda i: (i, 0))
    w_spec = pl.BlockSpec((Kp, Op), lambda i: (0, 0))
    row_spec = pl.BlockSpec((TM, Op), lambda i: (i, 0))
    st_spec = pl.BlockSpec((1, 2, Op), lambda i: (i, 0, 0))
    vec_spec = pl.BlockSpec((1, Op), lambda i: (0, 0))
    stats_shape = jax.ShapeDtypeStruct((num_tiles, 2, Op), jnp.float32)

    gemm_flops = 2 * Mp * Kp * Op
    out_isz = jnp.dtype(out_dtype).itemsize
    # k>1 layers: store bf16 pre-BN acc, make pass 2 a pure epilogue.
    use_epilogue = Kp >= 2 * Op

    # ---- kernels (closures over TM, M) ----
    def gemm_acc_stats_kernel(p_ref, w_ref, acc_ref, st_ref):
        acc = jnp.dot(p_ref[...], w_ref[...], preferred_element_type=jnp.float32)
        acc_ref[...] = acc.astype(acc_ref.dtype)
        s, m2 = _tile_stats(acc, TM, M)
        st_ref[0, 0:1, :] = s
        st_ref[0, 1:2, :] = m2

    def gemm_stats_kernel(p_ref, w_ref, st_ref):
        acc = jnp.dot(p_ref[...], w_ref[...], preferred_element_type=jnp.float32)
        s, m2 = _tile_stats(acc, TM, M)
        st_ref[0, 0:1, :] = s
        st_ref[0, 1:2, :] = m2

    def bn_relu_epilogue_kernel(acc_ref, sc_ref, sh_ref, o_ref):
        y = acc_ref[...].astype(jnp.float32) * sc_ref[...] + sh_ref[...]
        o_ref[...] = jnp.maximum(y, 0.0).astype(o_ref.dtype)

    def gemm_bn_relu_kernel(p_ref, w_ref, sc_ref, sh_ref, o_ref):
        acc = jnp.dot(p_ref[...], w_ref[...], preferred_element_type=jnp.float32)
        y = acc * sc_ref[...] + sh_ref[...]
        o_ref[...] = jnp.maximum(y, 0.0).astype(o_ref.dtype)

    # ---- pass 1: GEMM (+ bf16 acc for k>1 layers) + per-tile centered stats ----
    if use_epilogue:
        acc_bf16, stats = pl.pallas_call(
            gemm_acc_stats_kernel,
            out_shape=(jax.ShapeDtypeStruct((Mp, Op), jnp.bfloat16), stats_shape),
            grid=(num_tiles,),
            in_specs=[p_spec, w_spec],
            out_specs=(row_spec, st_spec),
            compiler_params=cp,
            cost_estimate=pl.CostEstimate(
                flops=gemm_flops, transcendentals=0,
                bytes_accessed=2 * Mp * Kp + 2 * Kp * Op + 2 * Mp * Op + 8 * num_tiles * Op),
        )(patches, w)
    else:
        acc_bf16 = None
        stats = pl.pallas_call(
            gemm_stats_kernel,
            out_shape=stats_shape,
            grid=(num_tiles,),
            in_specs=[p_spec, w_spec],
            out_specs=st_spec,
            compiler_params=cp,
            cost_estimate=pl.CostEstimate(
                flops=gemm_flops, transcendentals=0,
                bytes_accessed=2 * Mp * Kp + 2 * Kp * Op + 8 * num_tiles * Op),
        )(patches, w)

    # ---- tiny XLA glue: Chan-combine per-tile stats, fold the BN affine ----
    counts = jnp.minimum(TM, M - TM * jnp.arange(num_tiles)).astype(jnp.float32)   # (T,)
    s_t = stats[:, 0, :]                                     # (T, Op)
    m2_t = stats[:, 1, :]                                    # (T, Op)
    mean = jnp.sum(s_t, axis=0) / M                          # (Op,)
    mu_t = s_t / counts[:, None]
    m2 = jnp.sum(m2_t, axis=0) + jnp.sum(counts[:, None] * jnp.square(mu_t - mean[None, :]), axis=0)
    var = jnp.maximum(m2 / M, 0.0)                           # biased batch variance (BN)
    inv = jax.lax.rsqrt(var + EPS)
    scale = (layer["gamma"] * inv).reshape(1, Op).astype(jnp.float32)
    shift = (layer["beta"] - mean * layer["gamma"] * inv).reshape(1, Op).astype(jnp.float32)

    # ---- pass 2: BN+ReLU epilogue (k>1) or fused GEMM recompute (1x1), lane-dense ----
    if use_epilogue:
        out = pl.pallas_call(
            bn_relu_epilogue_kernel,
            out_shape=jax.ShapeDtypeStruct((Mp, Op), out_dtype),
            grid=(num_tiles,),
            in_specs=[row_spec, vec_spec, vec_spec],
            out_specs=row_spec,
            compiler_params=cp,
            cost_estimate=pl.CostEstimate(
                flops=3 * Mp * Op, transcendentals=0,
                bytes_accessed=2 * Mp * Op + 8 * Op + Mp * Op * out_isz),
        )(acc_bf16, scale, shift)
    else:
        out = pl.pallas_call(
            gemm_bn_relu_kernel,
            out_shape=jax.ShapeDtypeStruct((Mp, Op), out_dtype),
            grid=(num_tiles,),
            in_specs=[p_spec, w_spec, vec_spec, vec_spec],
            out_specs=row_spec,
            compiler_params=cp,
            cost_estimate=pl.CostEstimate(
                flops=gemm_flops + 3 * Mp * Op, transcendentals=0,
                bytes_accessed=2 * Mp * Kp + 2 * Kp * Op + 8 * Op + Mp * Op * out_isz),
        )(patches, w, scale, shift)

    return out[:M].reshape(N, Ho, Wo, Op)
    # TODO(synk): the 64 zero lane-pad channels of the inner (c_out=64) activations are
    # still written/read; folding spatial positions into the lane dim (or an Op=64
    # masked-store variant) is a further ~2x activation-bandwidth saving to evaluate.


# --------------------------- params / pre-packing ---------------------------

def init_spatial_path_params(key, in_planes, out_planes, inner=64):
    """Deterministic synthetic params: (conv weight OIHW, bn gamma, bn beta) per layer."""
    specs = [(in_planes, inner, 7), (inner, inner, 3), (inner, inner, 3), (inner, out_planes, 1)]
    raw = []
    for idx, (cin, cout, k) in enumerate(specs):
        kw_, kg, kb = jax.random.split(jax.random.fold_in(key, idx), 3)
        fan_in = cin * k * k
        w = jax.random.normal(kw_, (cout, cin, k, k), jnp.float32) / jnp.sqrt(fan_in)
        gamma = 1.0 + 0.1 * jax.random.normal(kg, (cout,), jnp.float32)
        beta = 0.1 * jax.random.normal(kb, (cout,), jnp.float32)
        raw.append((w, gamma, beta))
    return raw


def prepack_conv_bn(w_oihw, gamma, beta, stride, pad):
    """One-time packing: OIHW -> (Kp, Op) bf16 GEMM weight (lane-dense Op), padded BN params."""
    O, I, kh, kw = w_oihw.shape
    K = kh * kw * I
    Kp = _round_up(K, 128)
    Op = _round_up(O, 128)
    w = jnp.transpose(w_oihw, (2, 3, 1, 0)).reshape(K, O)   # (kh,kw,I,O) -> matches im2col order
    w = jnp.pad(w, ((0, Kp - K), (0, Op - O))).astype(jnp.bfloat16)
    g = jnp.pad(gamma.astype(jnp.float32), (0, Op - O))
    b = jnp.pad(beta.astype(jnp.float32), (0, Op - O))
    return dict(w=w, gamma=g, beta=b, kh=kh, kw=kw, stride=stride, pad=pad,
                c_in=I, c_out=O, Kp=Kp, Op=Op)


def prepack_spatial_path(raw_params):
    return [prepack_conv_bn(w, g, b, s, p)
            for (w, g, b), s, p in zip(raw_params, STRIDES, PADS)]


# --------------------------------- forward ----------------------------------

def spatial_path_forward(x_nchw, packed, tm_target=TM_TARGET):
    # conv_7x7 (k7,s2,p3) -> conv_3x3_1 (k3,s2,p1) -> conv_3x3_2 (k3,s2,p1) -> conv_1x1 (k1,s1,p0)
    x = jnp.transpose(x_nchw, (0, 2, 3, 1)).astype(jnp.bfloat16)   # NCHW -> NHWC, bf16 GEMM inputs
    n = len(packed)
    for li, layer in enumerate(packed):
        out_dtype = jnp.float32 if li == n - 1 else jnp.bfloat16
        x = conv_bn_relu(x, layer, out_dtype, tm_target=tm_target)
    x = x[..., :packed[-1]["c_out"]]                                # drop lane padding
    return jnp.transpose(x, (0, 3, 1, 2))                          # back to NCHW
    # TODO(synk): BatchNorm running-mean/var updates (a training-time side effect) are not
    # replicated; output matches PyTorch training-mode batch-stat normalization.


# --------------------------- pure-JAX reference -----------------------------

def _reference_forward(x_nchw, raw_params):
    x = jnp.transpose(x_nchw, (0, 2, 3, 1)).astype(jnp.float32)
    for (w, g, b), s, p in zip(raw_params, STRIDES, PADS):
        x = x.astype(jnp.bfloat16).astype(jnp.float32)   # match the kernel's bf16 GEMM inputs
        wk = jnp.transpose(w, (2, 3, 1, 0)).astype(jnp.bfloat16).astype(jnp.float32)  # HWIO
        y = jax.lax.conv_general_dilated(
            x, wk, window_strides=(s, s), padding=((p, p), (p, p)),
            dimension_numbers=("NHWC", "HWIO", "NHWC"))
        mean = jnp.mean(y, axis=(0, 1, 2))
        var = jnp.mean(jnp.square(y - mean), axis=(0, 1, 2))
        y = (y - mean) * jax.lax.rsqrt(var + EPS) * g + b
        x = jnp.maximum(y, 0.0)
    return jnp.transpose(x, (0, 3, 1, 2))


if __name__ == "__main__":
    key = jax.random.PRNGKey(0)
    in_planes, out_planes = 4, 128
    x = jax.random.normal(jax.random.fold_in(key, 100), (2, in_planes, 16, 16), jnp.float32)
    raw = init_spatial_path_params(key, in_planes, out_planes)
    packed = prepack_spatial_path(raw)

    out = jax.block_until_ready(spatial_path_forward(x, packed))

    assert out.shape == (2, out_planes, 2, 2), out.shape
    assert out.dtype == jnp.float32
    assert bool(jnp.all(jnp.isfinite(out)))
    assert bool(jnp.all(out >= 0.0))          # ReLU output

    # Exercise a different multi-tile grid partition (layer 0 splits into 4 tiles at 32).
    out_tiled = jax.block_until_ready(spatial_path_forward(x, packed, tm_target=32))
    assert bool(jnp.allclose(out, out_tiled, rtol=1e-3, atol=1e-3))

    # Cross-check against a pure-JAX (XLA conv + BN + ReLU) reference.
    ref = jax.block_until_ready(_reference_forward(x, raw))
    assert bool(jnp.allclose(out, ref, rtol=1e-1, atol=1e-1)), float(jnp.max(jnp.abs(out - ref)))

    print("KERNEL_OK")
</pallas_src>

<mosaic_0001>
module attributes {stable_mosaic.version = 11 : i64} {
  func.func @gemm_acc_stats_kernel(%arg0: i32, %arg1: memref<64x256xbf16, #tpu.memory_space<vmem>>, %arg2: memref<256x128xbf16, #tpu.memory_space<vmem>>, %arg3: memref<64x128xbf16, #tpu.memory_space<vmem>>, %arg4: memref<1x2x128xf32, #tpu.memory_space<vmem>>) attributes {dimension_semantics = [#tpu.dimension_semantics<parallel>], iteration_bounds = array<i64: 2>, scalar_prefetch = 0 : i64, scratch_operands = 0 : i64, tpu.core_type = #tpu.core_type<tc>, window_params = [{transform_indices = @transform_0, window_bounds = array<i64: 64, 256>}, {pipeline_mode = #tpu.pipeline_mode<synchronous>, transform_indices = @transform_1, window_bounds = array<i64: 256, 128>}, {transform_indices = @transform_2, window_bounds = array<i64: 64, 128>}, {transform_indices = @transform_3, window_bounds = array<i64: 1, 2, 128>}]} {
    %c0 = arith.constant 0 : index
    %c0_0 = arith.constant 0 : index
    %0 = vector.load %arg1[%c0, %c0_0] : memref<64x256xbf16, #tpu.memory_space<vmem>>, vector<64x256xbf16>
    %c0_1 = arith.constant 0 : index
    %c0_2 = arith.constant 0 : index
    %1 = vector.load %arg2[%c0_1, %c0_2] : memref<256x128xbf16, #tpu.memory_space<vmem>>, vector<256x128xbf16>
    %cst = arith.constant dense<0.000000e+00> : vector<64x128xf32>
    %2 = tpu.matmul %0, %1, %cst {dimension_numbers = #tpu.dot_dimension_numbers<[1], [0], [0], [1], [0, 0, 1, 1], [], []>} : vector<64x256xbf16>, vector<256x128xbf16>, vector<64x128xf32> -> vector<64x128xf32>
    %3 = arith.truncf %2 : vector<64x128xf32> to vector<64x128xbf16>
    %c0_3 = arith.constant 0 : index
    %c0_4 = arith.constant 0 : index
    %4 = vector.load %arg3[%c0_3, %c0_4] : memref<64x128xbf16, #tpu.memory_space<vmem>>, vector<64x128xbf16>
    tpu.vector_store %arg3[%c0_3, %c0_4], %3 {strides = array<i32>} : memref<64x128xbf16, #tpu.memory_space<vmem>>, vector<64x128xbf16>,
    %c64_i32 = arith.constant 64 : i32
    %5 = arith.muli %arg0, %c64_i32 : i32
    %c128_i32 = arith.constant 128 : i32
    %6 = arith.subi %c128_i32, %5 : i32
    %c64_i32_5 = arith.constant 64 : i32
    %7 = arith.minsi %c64_i32_5, %6 : i32
    %cst_6 = arith.constant dense<0.000000e+00> : vector<128xf32>
    %8 = vector.multi_reduction <add>, %2, %cst_6 [0] : vector<64x128xf32> to vector<128xf32>
    %9 = vector.shape_cast %8 : vector<128xf32> to vector<1x128xf32>
    %10 = arith.sitofp %7 : i32 to f32
    %11 = vector.broadcast %10 : f32 to vector<1x128xf32>
    %12 = arith.divf %9, %11 : vector<1x128xf32>
    %13 = tpu.iota {dimensions = array<i32: 0>} : vector<64x128xi32>
    %14 = vector.broadcast %7 : i32 to vector<64x128xi32>
    %15 = arith.cmpi slt, %13, %14 : vector<64x128xi32>
    %16 = vector.broadcast %12 : vector<1x128xf32> to vector<64x128xf32>
    %17 = arith.subf %2, %16 : vector<64x128xf32>
    %cst_7 = arith.constant 0.000000e+00 : f32
    %18 = vector.broadcast %cst_7 : f32 to vector<64x128xf32>
    %19 = arith.select %15, %17, %18 : vector<64x128xi1>, vector<64x128xf32>
    %20 = arith.mulf %19, %19 : vector<64x128xf32>
    %cst_8 = arith.constant dense<0.000000e+00> : vector<128xf32>
    %21 = vector.multi_reduction <add>, %20, %cst_8 [0] : vector<64x128xf32> to vector<128xf32>
    %22 = vector.shape_cast %21 : vector<128xf32> to vector<1x128xf32>
    %c0_9 = arith.constant 0 : index
    %c0_10 = arith.constant 0 : index
    %c0_11 = arith.constant 0 : index
    %23 = vector.load %arg4[%c0_9, %c0_10, %c0_11] : memref<1x2x128xf32, #tpu.memory_space<vmem>>, vector<1x1x128xf32>
    %24 = vector.shape_cast %23 : vector<1x1x128xf32> to vector<1x128xf32>
    %25 = vector.shape_cast %9 : vector<1x128xf32> to vector<1x1x128xf32>
    tpu.vector_store %arg4[%c0_9, %c0_10, %c0_11], %25 {strides = array<i32>} : memref<1x2x128xf32, #tpu.memory_space<vmem>>, vector<1x1x128xf32>,
    %c0_12 = arith.constant 0 : index
    %c1 = arith.constant 1 : index
    %c0_13 = arith.constant 0 : index
    %26 = vector.load %arg4[%c0_12, %c1, %c0_13] : memref<1x2x128xf32, #tpu.memory_space<vmem>>, vector<1x1x128xf32>
    %27 = vector.shape_cast %26 : vector<1x1x128xf32> to vector<1x128xf32>
    %28 = vector.shape_cast %22 : vector<1x128xf32> to vector<1x1x128xf32>
    tpu.vector_store %arg4[%c0_12, %c1, %c0_13], %28 {strides = array<i32>} : memref<1x2x128xf32, #tpu.memory_space<vmem>>, vector<1x1x128xf32>,
    return
  }
  func.func @transform_0(%arg0: i32) -> (i32, i32) {
    %c0_i32 = arith.constant 0 : i32
    %c0_i32_0 = arith.constant 0 : i32
    return %arg0, %c0_i32 : i32, i32
  }
  func.func @transform_1(%arg0: i32) -> (i32, i32) {
    %c0_i32 = arith.constant 0 : i32
    %c0_i32_0 = arith.constant 0 : i32
    %c0_i32_1 = arith.constant 0 : i32
    return %c0_i32, %c0_i32_0 : i32, i32
  }
  func.func @transform_2(%arg0: i32) -> (i32, i32) {
    %c0_i32 = arith.constant 0 : i32
    %c0_i32_0 = arith.constant 0 : i32
    return %arg0, %c0_i32 : i32, i32
  }
  func.func @transform_3(%arg0: i32) -> (i32, i32, i32) {
    %c0_i32 = arith.constant 0 : i32
    %c0_i32_0 = arith.constant 0 : i32
    %c0_i32_1 = arith.constant 0 : i32
    return %arg0, %c0_i32, %c0_i32_0 : i32, i32, i32
  }
}

</mosaic_0001>

<bundles_post_ra>
// kernel: tpu_custom_call.1
= control target key start
LH: loop header
LB: loop body
LE: loop exit
PB: predicated region body
PF: predicated region fallthrough
CT: control target
= control target key end

     0   :  { %9 = vsyncpa [#allocation3], 0  ;;  %s1454_s0 = inlined_call_operand.hbm [shape: bf16[128,256], index: 0, kind: input, shape index: {}]   ;;  %s1455_s1 = inlined_call_operand.hbm [shape: bf16[256,128], index: 1, kind: input, shape index: {}]   ;;  %s1456_s2 = inlined_call_operand.hbm [shape: bf16[128,128], index: 2, kind: output, shape index: {0}]   ;;  %s1457_s3 = inlined_call_operand.hbm [shape: f32[2,2,128], index: 3, kind: output, shape index: {1}]  }
   0x1   :  { %11 = vsyncpa [#allocation3 + $0x1], 0 }
   0x2   :  { %12 = vsyncpa [#allocation6], 0 }
   0x3   :  { %13 = vsyncpa [#allocation4], 0 }
   0x4   :  { %15 = vsyncpa [#allocation4 + $0x1], 0 }
   0x5   :  { %16 = vsyncpa [#allocation9], 0 }
   0x6   :  { %18 = vsyncpa [#allocation9 + $0x1], 0  ;;  %s1158_s12 = smov 0   ;;  %s1160_s13 = smov 0  }
   0x7   :  { %s1162_s14 = smov 0   ;;  %s1164_s15 = smov 0  }
   0x8 LB: > { %s1179_s16 = sadd.s32 4294967295, %s1126_s15   ;;  %s725_s17 = sadd.s32 4294967294, %s1126_s15   ;;  %s1126_s15 = sphi %s1164_s15, %s1477_s15   ;;  %s1122_s14 = sphi %s1162_s14, %s1476_s14   ;;  %s1118_s13 = sphi %s1160_s13, %s1475_s13   ;;  %s1114_s12 = sphi %s1158_s12, %s1474_s12  }
   0x9   : > { %p44_p0 = scmp.ne.s32.totalorder %s1118_s13, %s1114_s12  ;;  %p1458_p1 = scmp.eq.s32.totalorder %s1179_s16, 0 }
   0xa   : > { %p95_p3 = scmp.eq.s32.totalorder %s725_s17, 1  ;;  %p726_p5 = scmp.ge.s32.totalorder %s1126_s15, 1 }
   0xb   : > { %p1188_p4 = por %p1458_p1, %p44_p0  ;;  %p128_p7 = scmp.lt.s32.totalorder %s1126_s15, 3 }
   0xc   : > { %p1193_p6 = por %p95_p3, %p44_p0  ;;  %s1128_s21 = smov [#allocation5]  }
   0xd   : > { %s1461_s18 = scalar_select %p1188_p4, 1, 0 }
   0xe   : > { %s1462_s19 = scalar_select %p1193_p6, 1, 0 }
   0xf   : > { %p1198_p8 = pnand %p726_p5, %p128_p7  ;;  %s140_s22 = sshll.u32 %s1128_s21, 4  ;;  %s1202_s22 = int_to_ptr.vmem [resolvable:$true] %s140_s22 }
  0x10   : > { %s1214_s24 = sadd.s32 1, %s1126_s15   ;;  %s31_s25 = sadd.s32 1, %s1122_s14 }
  0x11   : > { %s1463_s20 = scalar_select %p1198_p8, 1, 0 }
  0x12   : > { %p878_p9 = pneg %p1198_p8  ;;  %s28_s26 = ssub.s32 %s1126_s15, %s1214_s24 }
  0x13   : > { %s966_s29 = scalar_lea.hbm %s1455_s1, 2048 }
  0x14   : > { %p1209_p11 = pnand %p878_p9, %p1458_p1  ;;  %p967_p12 = scmp.ne.s32.totalorder %s1455_s1, %s966_s29 }
  0x15   : > { %p973_p5 = scmp.lt.u32.totalorder %s966_s29, %s1455_s1 }
  0x16   : > { %p968_p13 = pneg %p1209_p11 }
  0x18   : > { %p969_p0 = pnand %p968_p13, %p967_p12 }
  0x1a   : > { %p970_p3 = pneg %p969_p0 }
  0x1c   : > { %p975_p7 = pnand %p973_p5, %p970_p3 }
  0x1e   : > { %978 = shalt.err (!%p975_p7)
}
  0x1f   : > { %s979_s7 = scalar_lea.vmem %s1202_s22, 2048  ;;  %p987_p2 = scmp.lt.s32.totalorder %s1202_s22, %s1202_s22 }
  0x20   : > { %p980_p9 = scmp.ne.s32.totalorder %s1202_s22, %s979_s7  ;;  %p988_p6 = scmp.lt.s32.totalorder %s979_s7, %s979_s7 }
  0x22   : > { %p982_p10 = pnand %p980_p9, %p968_p13  ;;  %p989_p4 = por %p988_p6, %p987_p2 }
  0x24   : > { %p983_p1 = pneg %p982_p10 }
  0x26   : > { %p990_p8 = pnand %p989_p4, %p983_p1 }
  0x28   : > { %993 = shalt.err (!%p990_p8)
}
  0x29   : > { %s1129_s8 = smov 64   ;;  %s1130_s9 = smov 4  }
  0x2a   : > { %881 = dma.hbm_to_vmem [thread:$0]  (!%p1209_p11), %s1455_s1, 2048, %s1202_s22, [#allocation6], %s1129_s8, %s1129_s8, %s1130_s9  }
  0x2b   : > { %p29_p2 = scmp.eq.s32.totalorder %s28_s26, 0  ;;  %p38_p1 = scmp.ne.s32.totalorder %s1122_s14, %s1118_s13 }
  0x2c   : > { %p39_p4 = scmp.eq.s32.totalorder %s1126_s15, 0  ;;  %p894_p6 = scmp.lt.s32.totalorder %s1126_s15, 2 }
  0x2d   : > { %s1245_s17 = scalar_select %p29_p2, %s1122_s14, %s31_s25  }
  0x2e   : > { %p40_p8 = por %p39_p4, %p38_p1  ;;  %p1465_p10 = scmp.eq.s32.totalorder %s1179_s16, 1 }
  0x2f   : > { %s154_s27 = sand.u32 1, %s1122_s14   ;;  %s779_s28 = sshll.u32 %s1126_s15, 10 }
  0x30   : > { %p1249_p12 = por %p1465_p10, %p38_p1  ;;  %s729_s29 = sshll.u32 %s154_s27, 6 }
  0x31   : > { %s1258_s4 = scalar_lea.hbm %s1454_s0, %s779_s28  ;;  %s158_s22 = scalar_lea.vmem [#allocation2], %s729_s29 }
  0x32   : > { %s166_s25 = sshll.u32 %s158_s22, 4  ;;  %p1260_p11 = pnand %p894_p6, %p40_p8  ;;  %s1264_s25 = int_to_ptr.vmem [resolvable:$true] %s166_s25 }
  0x33   : > { %s1266_s5 = scalar_lea.sflag [#allocation3], %s154_s27  ;;  %s994_s6 = scalar_lea.hbm %s1258_s4, 1024 }
  0x34   : > { %p995_p13 = scmp.ne.s32.totalorder %s1258_s4, %s994_s6  ;;  %p996_p0 = pneg %p1260_p11 }
  0x35   : > { %s999_s9 = scalar_lea.hbm %s1454_s0, 2048  ;;  %p1000_p7 = scmp.lt.u32.totalorder %s1258_s4, %s1454_s0 }
  0x36   : > { %p997_p3 = pnand %p996_p0, %p995_p13  ;;  %p1001_p9 = scmp.lt.u32.totalorder %s999_s9, %s994_s6 }
  0x37   : > { %p1003_p1 = scmp.lt.u32.totalorder %s994_s6, %s1258_s4 }
  0x38   : > { %p998_p5 = pneg %p997_p3  ;;  %p1002_p2 = por %p1001_p9, %p1000_p7 }
  0x3a   : > { %p1004_p4 = por %p1003_p1, %p1002_p2 }
  0x3c   : > { %p1005_p6 = pnand %p1004_p4, %p998_p5 }
  0x3e   : > { %1008 = shalt.err (!%p1005_p6)
}
  0x3f   : > { %s1009_s27 = scalar_lea.vmem %s1264_s25, 1024  ;;  %s1131_s28 = smov [#allocation2]  }
  0x40   : > { %p1010_p8 = scmp.ne.s32.totalorder %s1264_s25, %s1009_s27  ;;  %s1014_s29 = sshll.u32 %s1131_s28, 4  ;;  %s1015_s29 = int_to_ptr.vmem [resolvable:$false] %s1014_s29 }
  0x41   : > { %s1016_s23 = scalar_lea.vmem %s1015_s29, 2048  ;;  %p1017_p3 = scmp.lt.s32.totalorder %s1264_s25, %s1015_s29 }
  0x42   : > { %p1012_p10 = pnand %p1010_p8, %p996_p0  ;;  %p1018_p7 = scmp.lt.s32.totalorder %s1016_s23, %s1009_s27 }
  0x44   : > { %p1013_p13 = pneg %p1012_p10  ;;  %p1019_p9 = por %p1018_p7, %p1017_p3 }
  0x46   : > { %p1020_p2 = pnand %p1019_p9, %p1013_p13 }
  0x48   : > { %1023 = shalt.err (!%p1020_p2)
}
  0x49   : > { %s1132_s30 = smov 128   ;;  %s1133_s22 = smov 8  }
  0x4a   : > { %885 = dma.hbm_to_vmem [thread:$0]  (!%p1260_p11), %s1258_s4, 1024, %s1264_s25, %s1266_s5, %s1132_s30, %s1132_s30, %s1133_s22  }
  0x4b   : > { %p1468_p0 = scmp.ne.s32.totalorder %s1463_s20, 0 }
  0x4c   : > { %s1297_s6 = sand.u32 (!%p1468_p0), 1, %s1118_s13   ;;  %p1469_p5 = scmp.ne.s32.totalorder (!%p1468_p0), %s1461_s18, 0 }
  0x4d   : > { %178 = sbr.rel (%p1468_p0) target bundleno = 426 (0x1aa), region = 28  ;;  %s734_s7 = sshll.u32 (!%p1468_p0), %s1297_s6, 6 }
  0x4e   : > { %s181_s8 = scalar_lea.sflag (!%p1468_p0), [#allocation3], %s1297_s6  ;;  %s1301_s9 = scalar_lea.vmem (!%p1468_p0), [#allocation2], %s734_s7 }
  0x54   : > { %1097 = dma.done.wait (%p1469_p5), %s181_s8, 1024  }
  0x55   : > { %1099 = vsyncadd (%p1469_p5), %s181_s8, 4294966272  ;;  %p1470_p11 = scmp.eq.s32.totalorder %s1179_s16, 0 }
  0x57   : > { %1101 = dma.done.wait (%p1470_p11), [#allocation6], 2048   ;;  %p1471_p1 = pmov %p1470_p11 }
  0x58   : > { %v936_v0 = vld [vmem:[#allocation5 + $0x40] sm:$0xff]   ;;  %v938_v2 = vld [vmem:[#allocation5 + $0x48] sm:$0xff]   ;;  %v940_v4 = vld [vmem:[#allocation5 + $0x50] sm:$0xff]   ;;  %s736_s18 = sshll.u32 %s1297_s6, 5  ;;  %s770_s20 = sshll.u32 %s1179_s16, 6 }
  0x59   : > { %1103 = vsyncadd (%p1471_p1), [#allocation6], 4294965248  ;;  %v937_v1 = vld [vmem:[#allocation5] sm:$0xff]   ;;  %812 = vmatprep.subr.bf16.mxu0 %v936_v0  ;;  %852 = vmatprep.subr.bf16.mxu1 %v936_v0  ;;  %v939_v3 = vld [vmem:[#allocation5 + $0x8] sm:$0xff]   ;;  %s501_s4 = ssub.s32 128, %s770_s20  ;;  %s208_s25 = scalar_lea.vmem [#allocation7], %s736_s18 }
  0x5a   : > { %813 = vmatpush3.bf16.msra.mxu0 %v937_v1  ;;  %860 = vmatpush3.bf16.msra.mxu1 %v937_v1  ;;  %v941_v5 = vld [vmem:[#allocation5 + $0x10] sm:$0xff]   ;;  %v942_v6 = vld [vmem:[#allocation5 + $0x58] sm:$0xff]   ;;  %v944_v8 = vld [vmem:[#allocation5 + $0x60] sm:$0xff]   ;;  %s597_s26 = sshll.u32 %s208_s25, 4  ;;  %p502_p4 = scmp.lt.s32.totalorder %s501_s4, 64  ;;  %s1340_s26 = int_to_ptr.vmem [resolvable:$true] %s597_s26 }
  0x5b   : > { %814 = vmatprep.subr.bf16.mxu0 %v938_v2  ;;  %853 = vmatprep.subr.bf16.mxu1 %v938_v2  ;;  %v943_v7 = vld [vmem:[#allocation5 + $0x18] sm:$0xff]   ;;  %v945_v9 = vld [vmem:[#allocation5 + $0x20] sm:$0xff]   ;;  %v946_v10 = vld [vmem:[#allocation5 + $0x68] sm:$0xff]   ;;  %s788_s5 = sshll.u32 %s1179_s16, 9  ;;  %s579_s29 = scalar_lea.sflag [#allocation4], %s1297_s6 }
  0x5c   : > { %v954_v11 = vld [vmem:[%s1301_s9 + $0x4] ss:$8 sps:$4 sm:$0xff]   ;;  %v948_v14 = vld [vmem:[#allocation5 + $0x70] sm:$0xff]   ;;  %v950_v16 = vld [vmem:[#allocation5 + $0x78] sm:$0xff]   ;;  %s1479_s4 = smov (!%p502_p4, %s501_s4), 64  ;;  %s1353_s27 = scalar_lea.hbm %s1456_s2, %s788_s5 }
  0x5d   : > { %v957_v12 = vld [vmem:[%s1301_s9 + $0x24] ss:$8 sps:$4 sm:$0xff]   ;;  %427 = vmatprep.mubr.bf16.mxu0 %v954_v11  ;;  %v949_v15 = vld [vmem:[#allocation5 + $0x30] sm:$0xff]   ;;  %v951_v17 = vld [vmem:[#allocation5 + $0x38] sm:$0xff]   ;;  %s517_s28 = scvt.s32.f32 %s1479_s4  ;;  %s1024_s23 = scalar_lea.vmem %s1340_s26, 512 }
  0x5e   : > { %815 = vmatpush3.bf16.msra.mxu0 %v939_v3  ;;  %861 = vmatpush3.bf16.msra.mxu1 %v939_v3  ;;  %v947_v13 = vld [vmem:[#allocation5 + $0x28] sm:$0xff]   ;;  %v958_v20 = vld [vmem:[%s1301_s9 + $0x14] ss:$8 sps:$4 sm:$0xff]   ;;  %v960_v22 = vld [vmem:[%s1301_s9 + $0x10] ss:$8 sps:$4 sm:$0xff]   ;;  %p1025_p6 = scmp.ne.s32.totalorder %s1340_s26, %s1024_s23  ;;  %s1134_s30 = smov [#allocation7]  }
  0x5f   : > { %816 = vmatprep.subr.bf16.mxu0 %v940_v4  ;;  %854 = vmatprep.subr.bf16.mxu1 %v940_v4  ;;  %v952_v18 = vld [vmem:[%s1301_s9] ss:$8 sps:$4 sm:$0xff]   ;;  %v961_v21 = vld [vmem:[%s1301_s9 + $0x34] ss:$8 sps:$4 sm:$0xff]   ;;  %v963_v23 = vld [vmem:[%s1301_s9 + $0x30] ss:$8 sps:$4 sm:$0xff]  }
  0x60   : > { %443 = vmatprep.mubr.bf16.mxu1 %v957_v12  ;;  %v955_v19 = vld [vmem:[%s1301_s9 + $0x20] ss:$8 sps:$4 sm:$0xff]   ;;  %p1026_p8 = pnand %p1025_p6, %p1249_p12  ;;  %s1028_s22 = sshll.u32 %s1134_s30, 4  ;;  %s1029_s22 = int_to_ptr.vmem [resolvable:$false] %s1028_s22 }
  0x61   : > { %s1030_s7 = scalar_lea.vmem %s1029_s22, 1024  ;;  %p1031_p13 = scmp.lt.s32.totalorder %s1340_s26, %s1029_s22 }
  0x62   : > { %817 = vmatpush3.bf16.msra.mxu0 %v941_v5  ;;  %862 = vmatpush3.bf16.msra.mxu1 %v941_v5  ;;  %p1027_p10 = pneg %p1026_p8  ;;  %p1032_p3 = scmp.lt.s32.totalorder %s1030_s7, %s1024_s23 }
  0x63   : > { %818 = vmatprep.subr.bf16.mxu0 %v942_v6  ;;  %855 = vmatprep.subr.bf16.mxu1 %v942_v6 }
  0x64   : > { %p1033_p7 = por %p1032_p3, %p1031_p13 }
  0x66   : > { %819 = vmatpush3.bf16.msra.mxu0 %v943_v7  ;;  %863 = vmatpush3.bf16.msra.mxu1 %v943_v7  ;;  %p1034_p9 = pnand %p1033_p7, %p1027_p10 }
  0x67   : > { %820 = vmatprep.subr.bf16.mxu0 %v944_v8  ;;  %856 = vmatprep.subr.bf16.mxu1 %v944_v8 }
  0x6a   : > { %821 = vmatpush3.bf16.msra.mxu0 %v945_v9  ;;  %864 = vmatpush3.bf16.msra.mxu1 %v945_v9 }
  0x6b   : > { %822 = vmatprep.subr.bf16.mxu0 %v946_v10  ;;  %857 = vmatprep.subr.bf16.mxu1 %v946_v10 }
  0x6e   : > { %823 = vmatpush3.bf16.msra.mxu0 %v947_v13  ;;  %865 = vmatpush3.bf16.msra.mxu1 %v947_v13 }
  0x6f   : > { %824 = vmatprep.subr.bf16.mxu0 %v948_v14  ;;  %858 = vmatprep.subr.bf16.mxu1 %v948_v14 }
  0x72   : > { %825 = vmatpush3.bf16.msra.mxu0 %v949_v15  ;;  %866 = vmatpush3.bf16.msra.mxu1 %v949_v15 }
  0x73   : > { %826 = vmatprep.subr.bf16.mxu0 %v950_v16  ;;  %859 = vmatprep.subr.bf16.mxu1 %v950_v16 }
  0x76   : > { %827 = vmatpush3.bf16.msra.mxu0 %v951_v17  ;;  %867 = vmatpush3.bf16.msra.mxu1 %v951_v17 }
  0x79   : > { %428 = vmatmul.mubr.bf16.vlgmr.msra.gmra.mrb[0].mxu0 %v952_v18  ;;  %444 = vmatmul.mubr.bf16.vlgmr.msra.gmra.mrb[0].mxu1 %v955_v19 }
  0x7a   : > { %435 = vmatprep.mubr.bf16.mxu0 %v958_v20  ;;  %451 = vmatprep.mubr.bf16.mxu1 %v961_v21 }
  0x81   : > { %436 = vmatmul.mubr.bf16.gmra.mrb[4].mxu0 %v960_v22  ;;  %452 = vmatmul.mubr.bf16.gmra.mrb[4].mxu1 %v963_v23 }
 0x14c   : > { %v828_v24 = vpop.f32.mrb[0].mxu0  ;;  %v840_v25 = vpop.f32.mrb[0].mxu1 }
 0x14d   : > { %v829_v26 = vpop.f32.mrb[1].mxu0  ;;  %v841_v27 = vpop.f32.mrb[1].mxu1 }
 0x14e   : > { %v1319_v28 = vadd.f32 %v829_v26, %v828_v24  ;;  %v831_v29 = vpop.f32.mrb[2].mxu0  ;;  %v1322_v30 = vadd.f32 %v841_v27, %v840_v25  ;;  %v843_v31 = vpop.f32.mrb[2].mxu1 }
 0x14f   : > { %v832_v32 = vpop.f32.mrb[3].mxu0  ;;  %v844_v33 = vpop.f32.mrb[3].mxu1 }
 0x150   : > { %v1325_v34 = vadd.f32 %v832_v32, %v831_v29  ;;  %v1327_v35 = vadd.f32 %v844_v33, %v843_v31 }
 0x152   : > { %v792_v36 = vpack.c.bf16 %v1325_v34, %v1319_v28  ;;  %v504_v37 = vadd.f32 %v1325_v34, %v1319_v28  ;;  %v802_v38 = vpack.c.bf16 %v1327_v35, %v1322_v30 }
 0x154   : > { %793 = vst [vmem:[%s208_s25] sm:$0xff] %v792_v36   ;;  %v834_v39 = vpop.f32.mrb[4].mxu0  ;;  %810 = vst [vmem:[%s208_s25 + $0x10] sm:$0xff] %v802_v38   ;;  %v846_v40 = vpop.f32.mrb[4].mxu1 }
 0x155   : > { %v835_v41 = vpop.f32.mrb[5].mxu0  ;;  %v847_v42 = vpop.f32.mrb[5].mxu1 }
 0x156   : > { %v1335_v43 = vadd.f32 %v835_v41, %v834_v39  ;;  %v837_v44 = vpop.f32.mrb[6].mxu0  ;;  %v1337_v45 = vadd.f32 %v847_v42, %v846_v40  ;;  %v849_v46 = vpop.f32.mrb[6].mxu1 }
 0x157   : > { %v838_v47 = vpop.f32.mrb[7].mxu0  ;;  %v850_v48 = vpop.f32.mrb[7].mxu1 }
 0x158   : > { %v505_v49 = vadd.f32 %v1335_v43, %v504_v37  ;;  %v1343_v50 = vadd.f32 %v838_v47, %v837_v44  ;;  %v1345_v51 = vadd.f32 %v850_v48, %v849_v46 }
 0x15a   : > { %v797_v52 = vpack.c.bf16 %v1343_v50, %v1335_v43  ;;  %v506_v53 = vadd.f32 %v1343_v50, %v505_v49  ;;  %v807_v54 = vpack.c.bf16 %v1345_v51, %v1337_v45 }
 0x15c   : > { %809 = vst [vmem:[%s208_s25 + $0x8] sm:$0xff] %v797_v52   ;;  %v507_v55 = vadd.f32 %v1322_v30, %v506_v53  ;;  %811 = vst [vmem:[%s208_s25 + $0x18] sm:$0xff] %v807_v54  }
 0x15d   : > { %1037 = shalt.err (!%p1034_p9)
}
 0x15e   : > { %s1038_s8 = scalar_lea.hbm %s1353_s27, 512  ;;  %s1042_s20 = scalar_lea.hbm %s1456_s2, 1024 }
 0x15f   : > { %p1039_p2 = scmp.ne.s32.totalorder %s1353_s27, %s1038_s8  ;;  %p1043_p11 = scmp.lt.u32.totalorder %s1353_s27, %s1456_s2 }
 0x160   : > { %p1044_p1 = scmp.lt.u32.totalorder %s1042_s20, %s1038_s8  ;;  %p1046_p6 = scmp.lt.u32.totalorder %s1038_s8, %s1353_s27 }
 0x161   : > { %p1040_p0 = pnand %p1039_p2, %p1249_p12 }
 0x162   : > { %p1045_p4 = por %p1044_p1, %p1043_p11 }
 0x163   : > { %p1041_p5 = pneg %p1040_p0 }
 0x164   : > { %p1047_p8 = por %p1046_p6, %p1045_p4 }
 0x166   : > { %p1048_p10 = pnand %p1047_p8, %p1041_p5 }
 0x168   : > { %1051 = shalt.err (!%p1048_p10)
}
 0x169   : > { %s1135_s10 = smov 64   ;;  %s1136_s11 = smov 4   ;;  %v508_v56 = vadd.f32 %v1327_v35, %v507_v55  ;;  %v518_v58 = vstv %s517_s28  ;;  %v521_v61 = vlaneseq  ;;  %v530_v7 = vstv %s1479_s4 }
 0x16a   : > { %874 = dma.vmem_to_hbm [thread:$0]  (%p1249_p12), %s1340_s26, 512, %s1353_s27, %s579_s29, %s1135_s10, %s1135_s10, %s1136_s11   ;;  %964 = vrcp.f32 %v518_v58 }
 0x16b   : > { %v509_v57 = vadd.f32 %v1337_v45, %v508_v56  ;;  %v522_v0 = vshrl.u32 %v521_v61, 7  ;;  %s737_s23 = sshll.u32 %s1297_s6, 1  ;;  %s775_s4 = sshll.u32 %s1179_s16, 5 }
 0x16c   : > { %s1393_s26 = scalar_lea.vmem [#allocation8], %s737_s23  ;;  %s1409_s30 = scalar_lea.hbm %s1457_s3, %s775_s4 }
 0x16d   : > { %v510_v59 = vadd.f32 %v1345_v51, %v509_v57  ;;  %v523_v4 = vadd.s32 8, %v522_v0  ;;  %v524_v5 = vadd.s32 16, %v522_v0  ;;  %v525_v9 = vadd.s32 24, %v522_v0  ;;  %s613_s27 = sshll.u32 %s1393_s26, 4  ;;  %s584_s22 = scalar_lea.sflag [#allocation9], %s1297_s6  ;;  %s1411_s27 = int_to_ptr.vmem [resolvable:$true] %s613_s27 }
 0x16e   : > { %v526_v10 = vadd.s32 32, %v522_v0  ;;  %vm531_vm0 = vcmp.lt.s32.totalorder %v522_v0, %v530_v7  ;;  %v527_v19 = vadd.s32 40, %v522_v0  ;;  %v528_v23 = vadd.s32 48, %v522_v0  ;;  %s1052_s7 = scalar_lea.vmem %s1411_s27, 32  ;;  %s1137_s16 = smov [#allocation8]  }
 0x16f   : > { %v511_v60 = vrot.slane %v510_v59, 4  ;;  %vm532_vm1 = vcmp.lt.s32.totalorder %v523_v4, %v530_v7  ;;  %vm533_vm2 = vcmp.lt.s32.totalorder %v524_v5, %v530_v7  ;;  %vm534_vm3 = vcmp.lt.s32.totalorder %v525_v9, %v530_v7  ;;  %p1053_p13 = scmp.ne.s32.totalorder %s1411_s27, %s1052_s7  ;;  %s1056_s8 = sshll.u32 %s1137_s16, 4  ;;  %s1057_s8 = int_to_ptr.vmem [resolvable:$false] %s1056_s8 }
 0x170   : > { %vm535_vm4 = vcmp.lt.s32.totalorder %v526_v10, %v530_v7  ;;  %v529_v27 = vadd.s32 56, %v522_v0  ;;  %vm536_vm5 = vcmp.lt.s32.totalorder %v527_v19, %v530_v7  ;;  %vm537_vm6 = vcmp.lt.s32.totalorder %v528_v23, %v530_v7  ;;  %s1058_s9 = scalar_lea.vmem %s1057_s8, 64  ;;  %p1059_p9 = scmp.lt.s32.totalorder %s1411_s27, %s1057_s8 }
 0x171   : > { %v512_v62 = vadd.f32 %v511_v60, %v510_v59  ;;  %p1054_p3 = pnand %p1053_p13, %p1249_p12  ;;  %p1060_p2 = scmp.lt.s32.totalorder %s1058_s9, %s1052_s7 }
 0x172   : > { %vm538_vm7 = vcmp.lt.s32.totalorder %v529_v27, %v530_v7 }
 0x173   : > { %v513_v63 = vrot.slane %v512_v62, 2  ;;  %p1055_p7 = pneg %p1054_p3  ;;  %p1061_p0 = por %p1060_p2, %p1059_p9 }
 0x174   : > { %v965_v3 = vpop.eup %964 }
 0x175   : > { %v514_v1 = vadd.f32 %v513_v63, %v512_v62  ;;  %p1062_p5 = pnand %p1061_p0, %p1055_p7 }
 0x177   : > { %v515_v2 = vrot.slane %v514_v1, 1 }
 0x179   : > { %v516_v6 = vadd.f32 %v515_v2, %v514_v1 }
 0x17b   : > { %v520_v8 = vmul.f32 %v965_v3, %v516_v6  ;;  %576 = vst [vmem:[%s1393_s26] sm:$0x1] %v516_v6 }
 0x17d   : > { %v539_v11 = vsub.f32 %v1319_v28, %v520_v8  ;;  %v540_v12 = vsub.f32 %v1325_v34, %v520_v8  ;;  %v541_v13 = vsub.f32 %v1335_v43, %v520_v8  ;;  %v542_v14 = vsub.f32 %v1343_v50, %v520_v8 }
 0x17e   : > { %v543_v15 = vsub.f32 %v1322_v30, %v520_v8  ;;  %v544_v16 = vsub.f32 %v1327_v35, %v520_v8  ;;  %v545_v17 = vsub.f32 %v1337_v45, %v520_v8  ;;  %v546_v18 = vsub.f32 %v1345_v51, %v520_v8 }
 0x17f   : > { %v547_v20 = vsel %vm531_vm0, %v539_v11, 0.0  ;;  %v548_v21 = vsel %vm532_vm1, %v540_v12, 0.0  ;;  %v549_v22 = vsel %vm533_vm2, %v541_v13, 0.0  ;;  %v550_v26 = vsel %vm534_vm3, %v542_v14, 0.0 }
 0x180   : > { %v555_v24 = vmul.f32 %v547_v20, %v547_v20  ;;  %v556_v25 = vmul.f32 %v548_v21, %v548_v21  ;;  %v557_v28 = vmul.f32 %v549_v22, %v549_v22  ;;  %v551_v30 = vsel %vm535_vm4, %v543_v15, 0.0 }
 0x181   : > { %v558_v31 = vmul.f32 %v550_v26, %v550_v26  ;;  %v552_v33 = vsel %vm536_vm5, %v544_v16, 0.0  ;;  %v559_v34 = vmul.f32 %v551_v30, %v551_v30  ;;  %v553_v36 = vsel %vm537_vm6, %v545_v17, 0.0 }
 0x182   : > { %v563_v29 = vadd.f32 %v556_v25, %v555_v24  ;;  %v560_v37 = vmul.f32 %v552_v33, %v552_v33  ;;  %v554_v39 = vsel %vm538_vm7, %v546_v18, 0.0  ;;  %v561_v40 = vmul.f32 %v553_v36, %v553_v36 }
 0x183   : > { %v562_v42 = vmul.f32 %v554_v39, %v554_v39 }
 0x184   : > { %v564_v32 = vadd.f32 %v563_v29, %v557_v28 }
 0x186   : > { %v565_v35 = vadd.f32 %v564_v32, %v558_v31 }
 0x188   : > { %v566_v38 = vadd.f32 %v565_v35, %v559_v34 }
 0x18a   : > { %v567_v41 = vadd.f32 %v566_v38, %v560_v37 }
 0x18c   : > { %v568_v43 = vadd.f32 %v567_v41, %v561_v40 }
 0x18e   : > { %v569_v44 = vadd.f32 %v568_v43, %v562_v42 }
 0x190   : > { %v570_v45 = vrot.slane %v569_v44, 4 }
 0x192   : > { %v571_v46 = vadd.f32 %v570_v45, %v569_v44 }
 0x194   : > { %v572_v47 = vrot.slane %v571_v46, 2 }
 0x196   : > { %v573_v48 = vadd.f32 %v572_v47, %v571_v46 }
 0x198   : > { %v574_v49 = vrot.slane %v573_v48, 1 }
 0x19a   : > { %v575_v50 = vadd.f32 %v574_v49, %v573_v48 }
 0x19c   : > { %577 = vst [vmem:[%s1393_s26 + $0x1] sm:$0x1] %v575_v50 }
 0x19d   : > { %1065 = shalt.err (!%p1062_p5)
}
 0x19e   : > { %s1066_s6 = scalar_lea.hbm %s1409_s30, 32  ;;  %s1070_s25 = scalar_lea.hbm %s1457_s3, 64 }
 0x19f   : > { %p1067_p11 = scmp.ne.s32.totalorder %s1409_s30, %s1066_s6  ;;  %p1071_p6 = scmp.lt.u32.totalorder %s1409_s30, %s1457_s3 }
 0x1a0   : > { %p1072_p8 = scmp.lt.u32.totalorder %s1070_s25, %s1066_s6  ;;  %p1074_p13 = scmp.lt.u32.totalorder %s1066_s6, %s1409_s30 }
 0x1a1   : > { %p1068_p1 = pnand %p1067_p11, %p1249_p12 }
 0x1a2   : > { %p1073_p10 = por %p1072_p8, %p1071_p6 }
 0x1a3   : > { %p1069_p4 = pneg %p1068_p1 }
 0x1a4   : > { %p1075_p3 = por %p1074_p13, %p1073_p10 }
 0x1a6   : > { %p1076_p7 = pnand %p1075_p3, %p1069_p4 }
 0x1a8   : > { %1079 = shalt.err (!%p1076_p7)
}
 0x1a9   : > { %875 = dma.vmem_to_hbm [thread:$0]  (%p1249_p12), %s1411_s27, 32, %s1409_s30, %s584_s22  }
 0x1aa PF: > { %s625_s11 = sand.u32 1, %s1114_s12   ;;  %p1472_p9 = scmp.ne.s32.totalorder %s1462_s19, 0 }
 0x1ab   : > { %p1473_p2 = scmp.ge.s32.totalorder %s1126_s15, 2  ;;  %s626_s23 = scalar_lea.sflag [#allocation4], %s625_s11 }
 0x1ad   : > { %p887_p0 = pnand %p1473_p2, %p1472_p9 }
 0x1af   : > { %1105 = dma.done.wait (!%p887_p0), %s626_s23, 512  }
 0x1b0   : > { %1107 = vsyncadd (!%p887_p0), %s626_s23, 4294966784  ;;  %s635_s26 = scalar_lea.sflag [#allocation9], %s625_s11 }
 0x1b1   : > { %1109 = dma.done.wait (!%p887_p0), %s635_s26, 32  }
 0x1b2   : > { %1111 = vsyncadd (!%p887_p0), %s635_s26, 4294967264  ;;  %p21_p12 = scmp.ge.s32.totalorder %s1214_s24, 4   ;;  %s1474_s12 = smov %s1118_s13 }
 0x1b3   : > { %s1475_s13 = smov %s1122_s14  ;;  %s1476_s14 = smov %s1245_s17 }
 0x1b4   : > { %s1477_s15 = smov %s1214_s24  ;;  %23 = sbr.rel (!%p21_p12) target bundleno = 8 (0x8), region = 94 }
 0x1bb   :  { %640 = vsyncpa [#allocation3], 1 }
 0x1bc   :  { %642 = vsyncpa [#allocation3 + $0x1], 1 }
 0x1bd   :  { %643 = vsyncpa [#allocation6], 1 }
 0x1be   :  { %644 = vsyncpa [#allocation4], 1 }
 0x1bf   :  { %646 = vsyncpa [#allocation4 + $0x1], 1 }
 0x1c0   :  { %647 = vsyncpa [#allocation9], 1 }
 0x1c1   :  { %649 = vsyncpa [#allocation9 + $0x1], 1 }

</bundles_post_ra>
